<compile_context>
chip_gen: v6e
topology: v6e:2x2x1
jax: 0.10.0
libtpu: 0.0.40
codegen_flags: <defaults>
</compile_context>

<pallas_src>
import jax
import jax.numpy as jnp
from jax.experimental import pallas as pl
from jax.experimental.pallas import tpu as pltpu

_LANES = 128                     # vreg lane width: keep the output last dim lane-dense
_FLAT_TILE_ROWS = 4096           # rows per block in the flat (N, 128) view (~2 MiB f32)
_BLOCK_BYTES = 2 * 1024 * 1024   # target block footprint in the 2-D path (~2 MiB)
_MAX_COL_TILE = 2048             # cap on the lane-dim tile in the 2-D path


def make_pos_mat(embedding_size: int, max_len: int, dtype=jnp.float32) -> jnp.ndarray:
    """Sinusoidal table identical to the PyTorch __init__ (note: base 100000.0, the
    module's literal value, not the canonical 10000.0).  Requires even embedding_size.
    Pass dtype=jnp.bfloat16 to halve the table's HBM stream when x is bf16."""
    assert embedding_size % 2 == 0, "pos_encoder needs an even embedding_size"
    position = jnp.arange(0, max_len, dtype=jnp.float32)[:, None]          # (max_len, 1)
    embedding_value = jnp.arange(0, embedding_size, 2, dtype=jnp.float32)  # (emb/2,)
    div_term = 1.0 / (jnp.float32(100000.0) ** (embedding_value / embedding_size))
    pos_mat = jnp.zeros((max_len, embedding_size), dtype=jnp.float32)
    pos_mat = pos_mat.at[:, 0::2].set(jnp.sin(position * div_term))
    pos_mat = pos_mat.at[:, 1::2].set(jnp.cos(position * div_term))
    return pos_mat.astype(dtype)


def _pos_add_kernel(x_ref, pos_ref, o_ref):
    # Element-wise add with f32 accumulation (identity casts when inputs are f32) and a
    # single cast back to the output dtype.
    o_ref[...] = (x_ref[...].astype(jnp.float32)
                  + pos_ref[...].astype(jnp.float32)).astype(o_ref.dtype)


def _round_down(v: int, m: int) -> int:
    return (v // m) * m


def _sublane_multiple(dtype) -> int:
    # Minimum legal second-minor tile: 8 for 32-bit, 16 for 16-bit, 32 for 8-bit dtypes.
    return 8 * max(1, 4 // dtype.itemsize)


def _row_tile(extent: int, budget_rows: int, sub: int) -> int:
    """Row tile: a multiple of `sub` near budget_rows, or the full extent.
    Keeps >= 2 grid steps when the extent allows it — v7x has 2 TensorCores and
    'parallel' only shards the grid when there is more than one step."""
    cand = max(sub, _round_down(budget_rows, sub))
    if extent >= 2 * sub:
        cand = min(cand, max(sub, _round_down(extent // 2, sub)))
    return extent if extent <= cand else cand


def _forward_2d(x: jnp.ndarray, pos_mat: jnp.ndarray, sub: int) -> jnp.ndarray:
    """Natural (seq_len, emb) tiling — used when emb is already lane-dense, or as the
    fallback for odd shapes.  Ragged last blocks are masked by Pallas, so the tiled path
    is legal for any seq_len / emb (no single-full-array branch, no VMEM blowups)."""
    seq_len, emb = x.shape
    itemsize = x.dtype.itemsize

    # Column tile: lane-dense (multiple of 128) whenever emb allows it.
    if emb % _LANES == 0:
        tc = min(emb, _MAX_COL_TILE)
    elif emb > 2 * _LANES:
        tc = min(_round_down(emb, _LANES), _MAX_COL_TILE)   # ragged last column block
    else:
        tc = emb                                            # narrow emb: masked stores

    tr = _row_tile(seq_len, _BLOCK_BYTES // (tc * itemsize), sub)
    pos_in = pos_mat
    if tr % sub != 0:
        # tr == seq_len (full-dim block for x) but not a legal tile against the taller
        # (max_len, emb) table -> pre-slice so both operands share the full row extent.
        # Only triggers for tiny seq_len (< 2*sub), so the copy is negligible.
        pos_in = pos_mat[:seq_len]

    grid = (pl.cdiv(seq_len, tr), pl.cdiv(emb, tc))
    out = pl.pallas_call(
        _pos_add_kernel,
        out_shape=jax.ShapeDtypeStruct((seq_len, emb), x.dtype),
        grid=grid,
        in_specs=[
            pl.BlockSpec((tr, tc), lambda i, j: (i, j)),
            pl.BlockSpec((tr, tc), lambda i, j: (i, j)),
        ],
        out_specs=pl.BlockSpec((tr, tc), lambda i, j: (i, j)),
        compiler_params=pltpu.CompilerParams(
            dimension_semantics=("parallel", "parallel")),
    )(x, pos_in)
    return out


def _forward_flat(x: jnp.ndarray, pos_mat: jnp.ndarray, sub: int) -> jnp.ndarray:
    """Lane-dense flattened path for narrow emb (< 128 / not a multiple of 128).
    The op is purely element-wise, so both operands are viewed as (N, 128) slabs and the
    stores become full-vreg (unmasked).  Row-major flattening makes the first
    seq_len*emb elements of pos_mat.ravel() exactly pos_mat[:seq_len].ravel(), so the
    same block index serves both operands."""
    seq_len, emb = x.shape
    nrows = (seq_len * emb) // _LANES
    x2 = x.reshape(nrows, _LANES)

    if pos_mat.size % _LANES == 0:
        pos2 = pos_mat.reshape(pos_mat.size // _LANES, _LANES)
    else:
        pos2 = pos_mat[:seq_len].reshape(nrows, _LANES)

    tile = _row_tile(nrows, _FLAT_TILE_ROWS, sub)
    if tile % sub != 0 and tile != pos2.shape[0]:
        # tile == nrows (full-dim for x2) but would be illegal against the taller pos2
        # view; slice pos2 down so both share the full row extent (tiny copy).
        pos2 = pos2[:nrows]

    # Note: a ragged last block may *read* pos2 rows beyond nrows (valid table data);
    # the corresponding output rows are masked on store, so the result is unaffected.
    # VMEM: 3 operands x 2 pipeline buffers x (4096*128*4 B) = 12 MiB at the max tile —
    # inside every generation's default scoped VMEM (16 MiB v5e, 32 MiB v6e/v7x).
    grid = (pl.cdiv(nrows, tile),)
    out = pl.pallas_call(
        _pos_add_kernel,
        out_shape=jax.ShapeDtypeStruct((nrows, _LANES), x.dtype),
        grid=grid,
        in_specs=[
            pl.BlockSpec((tile, _LANES), lambda i: (i, 0)),
            pl.BlockSpec((tile, _LANES), lambda i: (i, 0)),
        ],
        out_specs=pl.BlockSpec((tile, _LANES), lambda i: (i, 0)),
        compiler_params=pltpu.CompilerParams(dimension_semantics=("parallel",)),
    )(x2, pos2)
    return out.reshape(seq_len, emb)


def pos_encoder_forward(x: jnp.ndarray, pos_mat: jnp.ndarray) -> jnp.ndarray:
    """Forward pass of pos_encoder: x + pos_mat[:x.shape[0], :] as a Pallas TPU kernel.

    x: (seq_len, embedding_size); pos_mat: (max_len, embedding_size)."""
    if x.ndim != 2:
        raise ValueError("expected x of shape (seq_len, embedding_size)")
    seq_len, emb = x.shape
    max_len, emb_p = pos_mat.shape
    if emb != emb_p:
        raise ValueError(f"embedding size mismatch: x has {emb}, pos_mat has {emb_p}")
    if seq_len > max_len:
        raise ValueError(f"seq_len={seq_len} exceeds max_len={max_len} of the table")

    # Keep row tiles legal for both operands' dtypes (bf16 needs multiples of 16, etc.).
    sub = max(_sublane_multiple(x.dtype), _sublane_multiple(pos_mat.dtype))

    # TODO(synk): compute the sinusoids in-kernel (iota + sin/cos on the EUP) to drop
    # the table's HBM stream entirely (~33% less traffic) once sin/cos lowering is
    # verified on-target; until then the table is streamed (pass it in bf16 for bf16 x).
    if emb % _LANES == 0:
        return _forward_2d(x, pos_mat, sub)        # already lane-dense; no reshape at all
    if (seq_len * emb) % _LANES == 0:
        return _forward_flat(x, pos_mat, sub)      # fold to a lane-dense (N, 128) slab
    return _forward_2d(x, pos_mat, sub)            # rare odd shapes: masked narrow stores


if __name__ == "__main__":
    key = jax.random.PRNGKey(0)
    k1, k2, k3, k4 = jax.random.split(key, 4)

    cases = [
        # (emb, max_len, seq_len, key) — small shapes consistent with the module's usage
        (32, 16, 8, k1),    # module-like tiny shapes -> flat lane-dense path
        (128, 64, 32, k2),  # emb % 128 == 0 -> natural 2-D path, 2 row blocks
        (256, 40, 23, k3),  # ragged row blocks in the 2-D path
        (32, 16, 7, k4),    # odd seq_len & narrow emb -> full-block fallback
    ]
    for emb, max_len, seq_len, k in cases:
        pos_mat = make_pos_mat(emb, max_len)
        x = jax.random.normal(k, (seq_len, emb), dtype=jnp.float32)
        out = jax.block_until_ready(pos_encoder_forward(x, pos_mat))
        ref = x + pos_mat[:seq_len, :]
        assert out.shape == (seq_len, emb)
        assert jnp.allclose(out, ref, atol=1e-6), (
            f"Pallas output mismatch vs reference (emb={emb}, seq_len={seq_len})")

    print("KERNEL_OK")
</pallas_src>

<mosaic_0001>
module attributes {stable_mosaic.version = 11 : i64} {
  func.func @_pos_add_kernel(%arg0: i32, %arg1: memref<2x128xf32, #tpu.memory_space<vmem>>, %arg2: memref<2x128xf32, #tpu.memory_space<vmem>>, %arg3: memref<2x128xf32, #tpu.memory_space<vmem>>) attributes {dimension_semantics = [#tpu.dimension_semantics<parallel>], iteration_bounds = array<i64: 1>, scalar_prefetch = 0 : i64, scratch_operands = 0 : i64, tpu.core_type = #tpu.core_type<tc>, window_params = [{transform_indices = @transform_0, window_bounds = array<i64: 2, 128>}, {transform_indices = @transform_1, window_bounds = array<i64: 2, 128>}, {transform_indices = @transform_2, window_bounds = array<i64: 2, 128>}]} {
    %c0 = arith.constant 0 : index
    %c0_0 = arith.constant 0 : index
    %0 = vector.load %arg1[%c0, %c0_0] : memref<2x128xf32, #tpu.memory_space<vmem>>, vector<2x128xf32>
    %c0_1 = arith.constant 0 : index
    %c0_2 = arith.constant 0 : index
    %1 = vector.load %arg2[%c0_1, %c0_2] : memref<2x128xf32, #tpu.memory_space<vmem>>, vector<2x128xf32>
    %2 = arith.addf %0, %1 : vector<2x128xf32>
    %c0_3 = arith.constant 0 : index
    %c0_4 = arith.constant 0 : index
    %3 = vector.load %arg3[%c0_3, %c0_4] : memref<2x128xf32, #tpu.memory_space<vmem>>, vector<2x128xf32>
    tpu.vector_store %arg3[%c0_3, %c0_4], %2 {strides = array<i32>} : memref<2x128xf32, #tpu.memory_space<vmem>>, vector<2x128xf32>,
    return
  }
  func.func @transform_0(%arg0: i32) -> (i32, i32) {
    %c0_i32 = arith.constant 0 : i32
    %c0_i32_0 = arith.constant 0 : i32
    return %arg0, %c0_i32 : i32, i32
  }
  func.func @transform_1(%arg0: i32) -> (i32, i32) {
    %c0_i32 = arith.constant 0 : i32
    %c0_i32_0 = arith.constant 0 : i32
    return %arg0, %c0_i32 : i32, i32
  }
  func.func @transform_2(%arg0: i32) -> (i32, i32) {
    %c0_i32 = arith.constant 0 : i32
    %c0_i32_0 = arith.constant 0 : i32
    return %arg0, %c0_i32 : i32, i32
  }
}

</mosaic_0001>

<bundles_post_ra>
// kernel: tpu_custom_call.1
= control target key start
LH: loop header
LB: loop body
LE: loop exit
PB: predicated region body
PF: predicated region fallthrough
CT: control target
= control target key end

     0   :  { %7 = vsyncpa [#allocation3], 0  ;;  %s152_s0 = inlined_call_operand.hbm [shape: f32[2,128], index: 0, kind: input, shape index: {}]   ;;  %s153_s1 = inlined_call_operand.hbm [shape: f32[2,128], index: 1, kind: input, shape index: {}]   ;;  %s154_s2 = inlined_call_operand.hbm [shape: f32[2,128], index: 2, kind: output, shape index: {}]  }
   0x1   :  { %8 = vsyncpa [#allocation6], 0 }
   0x2   :  { %9 = vsyncpa [#allocation4], 0  ;;  %s125_s9 = smov [#allocation2]   ;;  %s126_s11 = smov [#allocation5]  }
   0x3   :  { %s16_s10 = sshll.u32 %s125_s9, 4  ;;  %s26_s12 = sshll.u32 %s126_s11, 4  ;;  %s17_s10 = int_to_ptr.vmem [resolvable:$true] %s16_s10  ;;  %s27_s12 = int_to_ptr.vmem [resolvable:$true] %s26_s12 }
   0x4   :  { %s67_s13 = scalar_lea.vmem %s17_s10, 32  ;;  %p72_p1 = scmp.lt.s32.totalorder %s17_s10, %s17_s10 }
   0x5   :  { %p68_p0 = scmp.ne.s32.totalorder %s17_s10, %s67_s13  ;;  %p73_p2 = scmp.lt.s32.totalorder %s67_s13, %s67_s13 }
   0x7   :  { %p74_p3 = por %p73_p2, %p72_p1 }
   0x9   :  { %p75_p4 = pnand %p74_p3, %p68_p0 }
   0xb   :  { %78 = shalt.err (!%p75_p4)
}
   0xc   :  { %19 = dma.hbm_to_vmem [thread:$0]  %s152_s0, 32, %s17_s10, [#allocation3]  }
   0xd   :  { %s87_s16 = scalar_lea.vmem %s27_s12, 32  ;;  %p92_p6 = scmp.lt.s32.totalorder %s27_s12, %s27_s12 }
   0xe   :  { %p88_p5 = scmp.ne.s32.totalorder %s27_s12, %s87_s16  ;;  %p93_p7 = scmp.lt.s32.totalorder %s87_s16, %s87_s16 }
  0x10   :  { %p94_p8 = por %p93_p7, %p92_p6 }
  0x12   :  { %p95_p9 = pnand %p94_p8, %p88_p5 }
  0x14   :  { %98 = shalt.err (!%p95_p9)
}
  0x15   :  { %29 = dma.hbm_to_vmem [thread:$0]  %s153_s1, 32, %s27_s12, [#allocation6]  }
  0x16   :  { %119 = dma.done.wait [#allocation3], 32  }
  0x17   :  { %120 = vsyncadd [#allocation3], 4294967264 }
  0x18   :  { %121 = dma.done.wait [#allocation6], 32  }
  0x19   :  { %122 = vsyncadd [#allocation6], 4294967264  ;;  %s127_s19 = smov [#allocation7]   ;;  %v36_v0 = vld [vmem:[#allocation2] sm:$0x3] }
  0x1a   :  { %s46_s20 = sshll.u32 %s127_s19, 4  ;;  %v37_v1 = vld [vmem:[#allocation5] sm:$0x3]  ;;  %s47_s20 = int_to_ptr.vmem [resolvable:$true] %s46_s20 }
  0x1b   :  { %v38_v2 = vadd.f32 %v37_v1, %v36_v0  ;;  %s99_s0 = scalar_lea.vmem %s47_s20, 32  ;;  %p104_p11 = scmp.lt.s32.totalorder %s47_s20, %s47_s20 }
  0x1c   :  { %p100_p10 = scmp.ne.s32.totalorder %s47_s20, %s99_s0  ;;  %p105_p12 = scmp.lt.s32.totalorder %s99_s0, %s99_s0 }
  0x1d   :  { %39 = vst [vmem:[#allocation7] sm:$0x3] %v38_v2 }
  0x1e   :  { %p106_p13 = por %p105_p12, %p104_p11 }
  0x20   :  { %p107_p0 = pnand %p106_p13, %p100_p10 }
  0x22   :  { %110 = shalt.err (!%p107_p0)
}
  0x23   :  { %49 = dma.vmem_to_hbm [thread:$0]  %s47_s20, 32, %s154_s2, [#allocation4]  }
  0x24   :  { %123 = dma.done.wait [#allocation4], 32  }
  0x25   :  { %124 = vsyncadd [#allocation4], 4294967264 }
  0x26   :  { %53 = vsyncpa [#allocation3], 1 }
  0x27   :  { %54 = vsyncpa [#allocation6], 1 }
  0x28   :  { %55 = vsyncpa [#allocation4], 1 }

</bundles_post_ra>
